<compile_context>
chip_gen: v5e
topology: v5e:2x2
jax: 0.10.0
libtpu: 0.0.40
codegen_flags: <defaults>
</compile_context>

<pallas_src>
import functools

import jax
import jax.numpy as jnp
from jax.experimental import pallas as pl
from jax.experimental.pallas import tpu as pltpu


def _round_up(x, m):
    return ((x + m - 1) // m) * m


def _cross_entropy_kernel(probs_ref, lbl_ref, partial_ref, picked_ref, *,
                          n_rows, tile_n, tile_c):
    """Grid = (batch tiles [parallel], class tiles [arbitrary]).

    Accumulates the gathered probability per row across class tiles in a
    (tile_n, 1) VMEM scratch, then writes this batch tile's partial NLL sum
    to its own (1, 1, 1) output block at the last class tile.
    """
    i = pl.program_id(0)          # batch tile (parallel across TensorCores)
    j = pl.program_id(1)          # class tile (sequential reduction)

    @pl.when(j == 0)
    def _init():
        picked_ref[...] = jnp.zeros_like(picked_ref)

    probs = probs_ref[...]                           # (tile_n, tile_c), native dtype
    labels = lbl_ref[...] - 1                        # (tile_n, 1) int32, 1-indexed -> 0-indexed

    # "gather" along the class dim: global lane index compare + select + row reduce.
    class_idx = j * tile_c + jax.lax.broadcasted_iota(jnp.int32, probs.shape, 1)
    onehot = class_idx == labels                     # broadcast (tile_n, 1) -> (tile_n, tile_c)
    picked_ref[...] += jnp.sum(
        jnp.where(onehot, probs, jnp.zeros_like(probs)),
        axis=1, keepdims=True).astype(jnp.float32)   # (tile_n, 1) f32

    @pl.when(j == pl.num_programs(1) - 1)
    def _finalize():
        # Mask rows belonging to the padding of a partial last batch tile
        # (defensively: mask picked before the log AND the nll afterwards).
        row_ids = i * tile_n + jax.lax.broadcasted_iota(jnp.int32, (tile_n, 1), 0)
        valid = row_ids < n_rows
        picked = jnp.where(valid, picked_ref[...], jnp.ones_like(picked_ref))
        nll = -jnp.log(picked + jnp.float32(1e-13))
        nll = jnp.where(valid, nll, jnp.zeros_like(nll))
        tile_sum = jnp.sum(nll, axis=0, keepdims=True)          # (1, 1)
        partial_ref[...] = tile_sum.reshape(1, 1, 1)


def cross_entropy_pallas(output, label, *, tile_n=None, tile_c=None):
    """output: (N, C) float probabilities (any float dtype); label: (N,) or (N,1) 1-indexed ints."""
    n, c = output.shape
    label2d = jnp.reshape(label, (-1, 1)).astype(jnp.int32)      # label.view(-1, 1)
    itemsize = jnp.dtype(output.dtype).itemsize

    # ~16 MiB per probs pipeline buffer: 2 buffers (+ tiny label/out/scratch)
    # stay within the 48 MiB scoped-VMEM limit set below, which itself leaves
    # headroom under v7x's 64 MiB physical VMEM.
    PROBS_BUFFER_BUDGET = 16 * 1024 * 1024

    # --- class-dim tiling (huge-C guard) ---
    if tile_c is None:
        if 8 * c * itemsize <= PROBS_BUFFER_BUDGET:
            tile_c = c                                           # common case: full class width
        else:
            # Even an 8-row stripe of full width would blow the budget: tile C
            # in 128-lane multiples so the kernel never OOMs VMEM.
            tile_c = max(128, ((PROBS_BUFFER_BUDGET // (8 * itemsize)) // 128) * 128)
            tile_c = min(tile_c, _round_up(c, 128))
    else:
        tile_c = int(tile_c)
        if tile_c >= c:
            tile_c = c
        else:
            assert tile_c % 128 == 0, "class tile must be a multiple of 128 lanes"

    # --- batch-dim tiling: byte-budgeted, no row cap ---
    if tile_n is None:
        tile_n = PROBS_BUFFER_BUDGET // max(tile_c * itemsize, 1)
    tile_n = max(8, (int(tile_n) // 8) * 8)                      # sublane multiple
    tile_n = min(tile_n, _round_up(n, 8))

    num_n_tiles = pl.cdiv(n, tile_n)
    num_c_tiles = pl.cdiv(c, tile_c)

    kernel = functools.partial(_cross_entropy_kernel,
                               n_rows=n, tile_n=tile_n, tile_c=tile_c)

    cost = pl.CostEstimate(
        flops=2 * n * c,
        transcendentals=n,
        bytes_accessed=n * c * itemsize + n * 4 + num_n_tiles * 4,
    )

    partials = pl.pallas_call(
        kernel,
        out_shape=jax.ShapeDtypeStruct((num_n_tiles, 1, 1), jnp.float32),
        grid_spec=pltpu.PrefetchScalarGridSpec(
            num_scalar_prefetch=0,
            grid=(num_n_tiles, num_c_tiles),
            in_specs=[
                pl.BlockSpec((tile_n, tile_c), lambda i, j: (i, j)),
                pl.BlockSpec((tile_n, 1), lambda i, j: (i, 0)),
            ],
            # One (1,1,1) partial-sum block per batch tile -> batch axis is
            # truly parallel (sharded across both TCs on v7x).
            out_specs=pl.BlockSpec((1, 1, 1), lambda i, j: (i, 0, 0)),
            scratch_shapes=[pltpu.VMEM((tile_n, 1), jnp.float32)],
        ),
        compiler_params=pltpu.CompilerParams(
            dimension_semantics=("parallel", "arbitrary"),
            vmem_limit_bytes=48 * 1024 * 1024,
        ),
        cost_estimate=cost,
    )(output, label2d)

    # Final tiny reduction + mean in the wrapper (num_n_tiles elements).
    return jnp.sum(partials) / jnp.float32(n)


if __name__ == "__main__":
    key = jax.random.PRNGKey(0)
    k1, k2 = jax.random.split(key)

    # Small shapes; N deliberately NOT a multiple of the forced batch tile and
    # C deliberately NOT a multiple of 128 so partial-tile masking on both
    # grid axes is exercised.
    N, C = 20, 160
    logits = jax.random.normal(k1, (N, C), dtype=jnp.float32)
    output = jax.nn.softmax(logits, axis=-1)          # classifier "probabilities"
    # labels are 1-indexed in the PyTorch module (it subtracts 1 before gather)
    label = jax.random.randint(k2, (N,), minval=1, maxval=C + 1, dtype=jnp.int32)

    # plain-JAX reference
    picked_ref = output[jnp.arange(N), label - 1]
    loss_ref = jnp.sum(-jnp.log(picked_ref + 1e-13)) / N

    # forced small batch tile -> 3 batch tiles with a masked partial last tile
    loss_a = cross_entropy_pallas(output, label, tile_n=8)
    jax.block_until_ready(loss_a)
    assert jnp.allclose(loss_a, loss_ref, rtol=1e-5, atol=1e-6), (loss_a, loss_ref)

    # class-tiled (huge-C guard) path: 2 class tiles, padded last class tile
    loss_b = cross_entropy_pallas(output, label, tile_n=8, tile_c=128)
    jax.block_until_ready(loss_b)
    assert jnp.allclose(loss_b, loss_ref, rtol=1e-5, atol=1e-6), (loss_b, loss_ref)

    # default byte-budgeted tile selection (single big batch tile here)
    loss_c = cross_entropy_pallas(output, label)
    jax.block_until_ready(loss_c)
    assert jnp.allclose(loss_c, loss_ref, rtol=1e-5, atol=1e-6), (loss_c, loss_ref)

    print("KERNEL_OK")
</pallas_src>

<mosaic_0001>
module attributes {stable_mosaic.version = 11 : i64} {
  func.func @_cross_entropy_kernel(%arg0: i32, %arg1: i32, %arg2: memref<8x160xf32, #tpu.memory_space<vmem>>, %arg3: memref<8x1xi32, #tpu.memory_space<vmem>>, %arg4: memref<1x1x1xf32, #tpu.memory_space<vmem>>, %arg5: memref<8x1xf32, #tpu.memory_space<vmem>>) attributes {dimension_semantics = [#tpu.dimension_semantics<parallel>, #tpu.dimension_semantics<arbitrary>], iteration_bounds = array<i64: 3, 1>, scalar_prefetch = 0 : i64, scratch_operands = 1 : i64, tpu.core_type = #tpu.core_type<tc>, window_params = [{transform_indices = @transform_0, window_bounds = array<i64: 8, 160>}, {transform_indices = @transform_1, window_bounds = array<i64: 8, 1>}, {transform_indices = @transform_2, window_bounds = array<i64: 1, 1, 1>}]} {
    %c0_i32 = arith.constant 0 : i32
    %0 = arith.cmpi eq, %arg1, %c0_i32 : i32
    %1 = arith.extui %0 : i1 to i32
    %c0_i32_0 = arith.constant 0 : i32
    %2 = arith.cmpi ne, %1, %c0_i32_0 : i32
    scf.if %2 {
      %cst_11 = arith.constant 0.000000e+00 : f32
      %23 = vector.broadcast %cst_11 : f32 to vector<8x1xf32>
      %c0_12 = arith.constant 0 : index
      %c0_13 = arith.constant 0 : index
      %24 = vector.load %arg5[%c0_12, %c0_13] : memref<8x1xf32, #tpu.memory_space<vmem>>, vector<8x1xf32>
      tpu.vector_store %arg5[%c0_12, %c0_13], %23 {strides = array<i32>} : memref<8x1xf32, #tpu.memory_space<vmem>>, vector<8x1xf32>,
    } else {
    }
    %c0 = arith.constant 0 : index
    %c0_1 = arith.constant 0 : index
    %3 = vector.load %arg2[%c0, %c0_1] : memref<8x160xf32, #tpu.memory_space<vmem>>, vector<8x160xf32>
    %c0_2 = arith.constant 0 : index
    %c0_3 = arith.constant 0 : index
    %4 = vector.load %arg3[%c0_2, %c0_3] : memref<8x1xi32, #tpu.memory_space<vmem>>, vector<8x1xi32>
    %c1_i32 = arith.constant 1 : i32
    %5 = vector.broadcast %c1_i32 : i32 to vector<8x1xi32>
    %6 = arith.subi %4, %5 : vector<8x1xi32>
    %c160_i32 = arith.constant 160 : i32
    %7 = arith.muli %arg1, %c160_i32 : i32
    %8 = tpu.iota {dimensions = array<i32: 1>} : vector<8x160xi32>
    %9 = vector.broadcast %7 : i32 to vector<8x160xi32>
    %10 = arith.addi %9, %8 : vector<8x160xi32>
    %11 = vector.broadcast %6 : vector<8x1xi32> to vector<8x160xi32>
    %12 = arith.cmpi eq, %10, %11 : vector<8x160xi32>
    %c0_4 = arith.constant 0 : index
    %c0_5 = arith.constant 0 : index
    %13 = vector.load %arg5[%c0_4, %c0_5] : memref<8x1xf32, #tpu.memory_space<vmem>>, vector<8x1xf32>
    %cst = arith.constant 0.000000e+00 : f32
    %14 = vector.broadcast %cst : f32 to vector<8x160xf32>
    %15 = arith.select %12, %3, %14 : vector<8x160xi1>, vector<8x160xf32>
    %cst_6 = arith.constant dense<0.000000e+00> : vector<8xf32>
    %16 = vector.multi_reduction <add>, %15, %cst_6 [1] : vector<8x160xf32> to vector<8xf32>
    %17 = vector.shape_cast %16 : vector<8xf32> to vector<8x1xf32>
    %18 = arith.addf %13, %17 : vector<8x1xf32>
    %c0_7 = arith.constant 0 : index
    %c0_8 = arith.constant 0 : index
    %19 = vector.load %arg5[%c0_7, %c0_8] : memref<8x1xf32, #tpu.memory_space<vmem>>, vector<8x1xf32>
    tpu.vector_store %arg5[%c0_7, %c0_8], %18 {strides = array<i32>} : memref<8x1xf32, #tpu.memory_space<vmem>>, vector<8x1xf32>,
    %c0_i32_9 = arith.constant 0 : i32
    %20 = arith.cmpi eq, %arg1, %c0_i32_9 : i32
    %21 = arith.extui %20 : i1 to i32
    %c0_i32_10 = arith.constant 0 : i32
    %22 = arith.cmpi ne, %21, %c0_i32_10 : i32
    scf.if %22 {
      %c8_i32 = arith.constant 8 : i32
      %23 = arith.muli %arg0, %c8_i32 : i32
      %24 = tpu.iota {dimensions = array<i32: 0>} : vector<8x1xi32>
      %25 = vector.broadcast %23 : i32 to vector<8x1xi32>
      %26 = arith.addi %25, %24 : vector<8x1xi32>
      %c20_i32 = arith.constant 20 : i32
      %27 = vector.broadcast %c20_i32 : i32 to vector<8x1xi32>
      %28 = arith.cmpi slt, %26, %27 : vector<8x1xi32>
      %c0_11 = arith.constant 0 : index
      %c0_12 = arith.constant 0 : index
      %29 = vector.load %arg5[%c0_11, %c0_12] : memref<8x1xf32, #tpu.memory_space<vmem>>, vector<8x1xf32>
      %cst_13 = arith.constant 1.000000e+00 : f32
      %30 = vector.broadcast %cst_13 : f32 to vector<8x1xf32>
      %31 = arith.select %28, %29, %30 : vector<8x1xi1>, vector<8x1xf32>
      %cst_14 = arith.constant 9.99999982E-14 : f32
      %32 = vector.broadcast %cst_14 : f32 to vector<8x1xf32>
      %33 = arith.addf %31, %32 : vector<8x1xf32>
      %34 = math.log %33 : vector<8x1xf32>
      %cst_15 = arith.constant 0.000000e+00 : f32
      %35 = vector.broadcast %cst_15 : f32 to vector<8x1xf32>
      %36 = arith.subf %35, %34 : vector<8x1xf32>
      %cst_16 = arith.constant 0.000000e+00 : f32
      %37 = vector.broadcast %cst_16 : f32 to vector<8x1xf32>
      %38 = arith.select %28, %36, %37 : vector<8x1xi1>, vector<8x1xf32>
      %cst_17 = arith.constant dense<0.000000e+00> : vector<1xf32>
      %39 = vector.multi_reduction <add>, %38, %cst_17 [0] : vector<8x1xf32> to vector<1xf32>
      %40 = vector.shape_cast %39 : vector<1xf32> to vector<1x1xf32>
      %41 = vector.shape_cast %40 : vector<1x1xf32> to vector<1x1x1xf32>
      %c0_18 = arith.constant 0 : index
      %c0_19 = arith.constant 0 : index
      %c0_20 = arith.constant 0 : index
      %42 = vector.load %arg4[%c0_18, %c0_19, %c0_20] : memref<1x1x1xf32, #tpu.memory_space<vmem>>, vector<1x1x1xf32>
      tpu.vector_store %arg4[%c0_18, %c0_19, %c0_20], %41 {strides = array<i32>} : memref<1x1x1xf32, #tpu.memory_space<vmem>>, vector<1x1x1xf32>,
    } else {
    }
    return
  }
  func.func @transform_0(%arg0: i32, %arg1: i32) -> (i32, i32) {
    %c0_i32 = arith.constant 0 : i32
    return %arg0, %arg1 : i32, i32
  }
  func.func @transform_1(%arg0: i32, %arg1: i32) -> (i32, i32) {
    %c0_i32 = arith.constant 0 : i32
    %c0_i32_0 = arith.constant 0 : i32
    return %arg0, %c0_i32 : i32, i32
  }
  func.func @transform_2(%arg0: i32, %arg1: i32) -> (i32, i32, i32) {
    %c0_i32 = arith.constant 0 : i32
    %c0_i32_0 = arith.constant 0 : i32
    %c0_i32_1 = arith.constant 0 : i32
    return %arg0, %c0_i32, %c0_i32_0 : i32, i32, i32
  }
}

</mosaic_0001>

<bundles_post_ra>
// kernel: tpu_custom_call.1
= control target key start
LH: loop header
LB: loop body
LE: loop exit
PB: predicated region body
PF: predicated region fallthrough
CT: control target
= control target key end

     0   :  { %7 = vsyncpa [#allocation4], 0  ;;  %s607_s0 = inlined_call_operand.hbm [shape: f32[20,160], index: 0, kind: input, shape index: {}]   ;;  %s608_s1 = inlined_call_operand.vmem [shape: s32[20,1], index: 1, kind: input, shape index: {}]   ;;  %s609_s2 = inlined_call_operand.vmem [shape: f32[3,1,1], index: 2, kind: output, shape index: {}]  }
   0x1   :  { %9 = vsyncpa [#allocation4 + $0x1], 0  ;;  %s508_s9 = smov 0   ;;  %s510_s10 = smov 0  }
   0x2   :  { %s512_s11 = smov 0   ;;  %s514_s12 = smov 0  }
   0x3   :  { %s516_s13 = smov 0   ;;  %s518_s14 = smov 0  }
   0x4 LB: > { %s334_s15 = sadd.s32 4294967295, %s489_s14   ;;  %s27_s16 = sadd.s32 1, %s485_s13  ;;  %s489_s14 = sphi %s518_s14, %s15_s14   ;;  %s485_s13 = sphi %s516_s13, %s616_s13   ;;  %s481_s12 = sphi %s514_s12, %s615_s12   ;;  %s477_s11 = sphi %s512_s11, %s614_s11   ;;  %s473_s10 = sphi %s510_s10, %s613_s10   ;;  %s469_s9 = sphi %s508_s9, %s612_s9  }
   0x5   : > { %p29_p0 = scmp.ge.s32.totalorder %s27_s16, 3  ;;  %s36_s17 = sadd.s32 1, %s477_s11 }
   0x6   : > { %p43_p1 = scmp.ne.s32.totalorder %s477_s11, %s473_s10  ;;  %p44_p2 = scmp.eq.s32.totalorder %s489_s14, 0 }
   0x7   : > { %s618_s16 = smov (%p29_p0, %s27_s16), 0  ;;  %p49_p4 = scmp.ne.s32.totalorder %s473_s10, %s469_s9 }
   0x8   : > { %p544_p3 = por %p44_p2, %p43_p1  ;;  %s31_s19 = ssub.s32 %s485_s13, %s618_s16 }
   0x9   : > { %p50_p5 = scmp.eq.s32.totalorder %s334_s15, 0  ;;  %p34_p6 = scmp.eq.s32.totalorder %s31_s19, 0 }
   0xa   : > { %p355_p8 = scmp.lt.s32.totalorder %s489_s14, 3  ;;  %s125_s22 = sand.u32 1, %s477_s11  }
   0xb   : > { %p551_p7 = por %p50_p5, %p49_p4  ;;  %s348_s23 = sshll.u32 %s485_s13, 4 }
   0xc   : > { %s557_s21 = scalar_select %p34_p6, %s477_s11, %s36_s17  }
   0xd   : > { %s338_s24 = sshll.u32 %s125_s22, 4  ;;  %s136_s27 = scalar_lea.hbm %s607_s0, %s348_s23 }
   0xe   : > { %s138_s28 = sshll.u32 %s136_s27, 4  ;;  %s129_s29 = scalar_lea.vmem [#allocation3], %s338_s24  ;;  %s139_s28 = int_to_ptr.hbm [resolvable:$true] %s138_s28 }
   0xf   : > { %s140_s30 = sshll.u32 %s129_s29, 4  ;;  %p352_p9 = pnand %p355_p8, %p544_p3  ;;  %s141_s30 = int_to_ptr.vmem [resolvable:$true] %s140_s30 }
  0x10   : > { %p341_p10 = scmp.ge.s32.totalorder %s489_s14, 1  ;;  %p152_p11 = scmp.lt.s32.totalorder %s489_s14, 4 }
  0x11   : > { %s126_s3 = scalar_lea.sflag [#allocation4], %s125_s22 }
  0x12   : > { %354 = dma.hbm_to_vmem [thread:$0]  (!%p352_p9), %s139_s28, 256, %s141_s30, %s126_s3  }
  0x13   : > { %p153_p12 = pnand %p341_p10, %p152_p11 }
  0x14   : > { %s158_s4 = sand.u32 (!%p153_p12), 1, %s473_s10  }
  0x15   : > { %156 = sbr.rel (%p153_p12) target bundleno = 311 (0x137), region = 28  ;;  %s342_s5 = sshll.u32 (!%p153_p12), %s158_s4, 4 }
  0x16   : > { %s159_s6 = scalar_lea.sflag (!%p153_p12), [#allocation4], %s158_s4  ;;  %s162_s7 = scalar_lea.vmem (!%p153_p12), [#allocation3], %s342_s5 }
  0x1a   : > { %464 = dma.done.wait (%p551_p7), %s159_s6, 256  }
  0x1b   : > { %466 = vsyncadd (%p551_p7), %s159_s6, 4294967040  ;;  %p187_p13 = scmp.lt.s32.totalorder %s481_s12, 2  ;;  %v491_v0 = vmov 0   ;;  %vm198_vm0 = vcmask 7168   ;;  %v492_v3 = vmov 0.0   ;;  %v205_v4 = vlaneseq  ;;  %v201_v7 = vld [vmem:[%s162_s7 + $0x8] sm:$0xff] }
  0x1c   : > { %406 = vset.pattern.permute.xlu0 %v491_v0  ;;  %199 = vst.msk [vmem:[#allocation2] sm:$0xff] %vm198_vm0, %v492_v3  ;;  %v200_v8 = vld [vmem:[%s162_s7] sm:$0xff]  ;;  %vm219_vm1 = vcmask 261120   ;;  %s345_s19 = sshll.u32 %s481_s12, 3  ;;  %vm250_vm5 = vcmask 0  }
  0x1d   : > { %s575_s8 = scalar_select %p187_p13, %s481_s12, 2  ;;  %v206_v5 = vand.u32 127, %v205_v4  ;;  %v232_v15 = vshrl.u32 %v205_v4, 7  ;;  %v233_v17 = vstv %s345_s19 }
  0x1f   : > { %s343_s9 = sshll.u32 %s575_s8, 3  ;;  %v207_v6 = vadd.s32 128, %v206_v5  ;;  %v234_v19 = vadd.s32 %v233_v17, %v232_v15  ;;  %s193_s22 = scalar_lea.vmem %s609_s2, %s575_s8 }
  0x20   : > { %s190_s18 = scalar_lea.vmem %s608_s1, %s343_s9 }
  0x21   : > { %v202_v1 = vld [vmem:[%s190_s18] sm:$0xff]  ;;  %vm235_vm4 = vcmp.lt.s32.totalorder %v234_v19, 20 }
  0x22   : > { %v344_v2 = vadd.s32 4294967295, %v202_v1 }
  0x23   : > { %v216_v14 = vld [vmem:[#allocation2] sm:$0xff] }
  0x24   : > { %212 = vperm.xlu0 %406, %v344_v2  }
  0x96   : > { %v213_v9 = vpop.permute.xlu0 %212 }
  0x97   : > { %vm214_vm2 = vcmp.eq.s32.totalorder %v206_v5, %v213_v9  ;;  %vm215_vm3 = vcmp.eq.s32.totalorder %v207_v6, %v213_v9 }
  0x98   : > { %v218_v10 = vsel %vm215_vm3, %v201_v7, 0.0  ;;  %v217_v11 = vsel %vm214_vm2, %v200_v8, 0.0 }
  0x99   : > { %v220_v12 = vsel %vm219_vm1, %v218_v10, 0.0 }
  0x9a   : > { %v221_v13 = vadd.f32 %v220_v12, %v217_v11 }
  0x9c   : > { %222 = vadd.xlane.f32.xlu0 %v221_v13 }
 0x10f   : > { %v223_v16 = vpop.xlane.xlu0 %222 }
 0x110   : > { %v224_v18 = vadd.f32 %v223_v16, %v216_v14 }
 0x112   : > { %226 = vst.msk [vmem:[#allocation2] sm:$0xff] %vm198_vm0, %v224_v18 }
 0x119   : > { %v236_v20 = vld [vmem:[#allocation2] sm:$0xff] }
 0x11a   : > { %v237_v21 = vsel %vm235_vm4, %v236_v20, 1.0 }
 0x11b   : > { %v238_v22 = vadd.f32 1e-13, %v237_v21 }
 0x11d   : > { %407 = vlog2.f32 %v238_v22 }
 0x123   : > { %v408_v23 = vpop.eup %407 }
 0x124   : > { %v240_v24 = vmul.f32 0.6931472, %v408_v23 }
 0x126   : > { %v241_v25 = vsub.f32 0.0, %v240_v24 }
 0x128   : > { %v242_v26 = vsel %vm235_vm4, %v241_v25, 0.0 }
 0x129   : > { %v243_v27 = vsel %vm198_vm0, %v242_v26, 0.0 }
 0x12a   : > { %v244_v28 = vrot.slane %v243_v27, 4 }
 0x12c   : > { %v245_v29 = vadd.f32 %v244_v28, %v243_v27 }
 0x12e   : > { %v246_v30 = vrot.slane %v245_v29, 2 }
 0x130   : > { %v247_v31 = vadd.f32 %v246_v30, %v245_v29 }
 0x132   : > { %v248_v32 = vrot.slane %v247_v31, 1 }
 0x134   : > { %v249_v33 = vadd.f32 %v248_v32, %v247_v31 }
 0x136   : > { %251 = vst.msk [vmem:[%s193_s22] sm:$0x1] %vm250_vm5, %v249_v33 }
 0x137 PF: > { %s15_s14 = sadd.s32 1, %s489_s14   ;;  %s612_s9 = smov %s473_s10 }
 0x138   : > { %p12_p0 = scmp.ge.s32.totalorder %s15_s14, 5   ;;  %s613_s10 = smov %s477_s11 }
 0x139   : > { %s614_s11 = smov %s557_s21  ;;  %s615_s12 = smov %s485_s13 }
 0x13a   : > { %s616_s13 = smov %s618_s16  ;;  %14 = sbr.rel (!%p12_p0) target bundleno = 4 (0x4), region = 79 }
 0x13f   :  { %269 = vsyncpa [#allocation4], 1 }
 0x140   :  { %271 = vsyncpa [#allocation4 + $0x1], 1 }

</bundles_post_ra>
